<compile_context>
chip_gen: v7x
topology: tpu7x:2x2x1
jax: 0.10.0
libtpu: 0.0.40
codegen_flags: <defaults>
</compile_context>

<pallas_src>
import functools

import jax
import jax.numpy as jnp
import numpy as np
from jax.experimental import pallas as pl
from jax.experimental.pallas import tpu as pltpu


# ----------------------------------------------------------------------------
# Fused kernel: out = LeakyReLU(x @ W1^T + b1) @ W2^T + b2
# ----------------------------------------------------------------------------
def _action_maker_kernel(x_ref, w1_ref, b1_ref, w2_ref, b2_ref, o_ref, *, slope):
    # x_ref : (bb, d_in)        one batch tile
    # w1_ref: (d_in, d_hid)     layer1 weight, already transposed to (in, out)
    # b1_ref: (1, d_hid)
    # w2_ref: (d_hid, d_out)    layer2 weight, already transposed to (in, out)
    # b2_ref: (1, d_out)
    # o_ref : (bb, d_out)
    h = jnp.dot(x_ref[...], w1_ref[...], preferred_element_type=jnp.float32)
    h = h + b1_ref[...]
    h = jnp.where(h >= 0, h, slope * h)                      # LeakyReLU(0.01)
    y = jnp.dot(h.astype(w2_ref.dtype), w2_ref[...],
                preferred_element_type=jnp.float32)
    o_ref[...] = (y + b2_ref[...]).astype(o_ref.dtype)


def action_maker_forward(params, x, *, negative_slope=0.01, max_block_b=512):
    """x: (B, num_stocks*num_features + 1) -> (B, num_stocks*num_actions)."""
    w1, b1, w2, b2 = params["w1"], params["b1"], params["w2"], params["b2"]
    B, d_in = x.shape
    d_hid = w1.shape[1]
    d_out = w2.shape[1]
    assert w1.shape[0] == d_in and w2.shape[0] == d_hid

    # Batch tile: whole batch for small B; 8-aligned tiles + padding for large B.
    if B <= max_block_b:
        bb = B
    else:
        bb = max_block_b                      # multiple of 8
    b_padded = pl.cdiv(B, bb) * bb
    x_p = x if b_padded == B else jnp.pad(x, ((0, b_padded - B), (0, 0)))

    out = pl.pallas_call(
        functools.partial(_action_maker_kernel, slope=negative_slope),
        grid=(b_padded // bb,),
        in_specs=[
            pl.BlockSpec((bb, d_in), lambda i: (i, 0)),      # batch tile
            pl.BlockSpec((d_in, d_hid), lambda i: (0, 0)),   # resident weights
            pl.BlockSpec((1, d_hid), lambda i: (0, 0)),
            pl.BlockSpec((d_hid, d_out), lambda i: (0, 0)),
            pl.BlockSpec((1, d_out), lambda i: (0, 0)),
        ],
        out_specs=pl.BlockSpec((bb, d_out), lambda i: (i, 0)),
        out_shape=jax.ShapeDtypeStruct((b_padded, d_out), jnp.float32),
        compiler_params=pltpu.CompilerParams(
            dimension_semantics=("parallel",)),              # independent batch tiles
    )(x_p, w1, b1, w2, b2)
    return out[:B]


# ----------------------------------------------------------------------------
# Parameter init mirroring the PyTorch module
#   layer1/layer2 weights: xavier_uniform_; biases: default nn.Linear init.
#   Weights are stored transposed, i.e. (fan_in, fan_out).
# ----------------------------------------------------------------------------
def init_action_maker(key, num_stocks, num_features, num_actions):
    d_in = num_stocks * num_features + 1
    d_hid = num_stocks * (num_features // 2)
    d_out = num_stocks * num_actions

    def xavier_t(k, fan_in, fan_out):
        lim = float(np.sqrt(6.0 / (fan_in + fan_out)))
        return jax.random.uniform(k, (fan_in, fan_out), jnp.float32, -lim, lim)

    def bias(k, fan_in, n):
        lim = float(1.0 / np.sqrt(fan_in))
        return jax.random.uniform(k, (1, n), jnp.float32, -lim, lim)

    k1, k2, k3, k4 = jax.random.split(key, 4)
    return {
        "w1": xavier_t(k1, d_in, d_hid),
        "b1": bias(k2, d_in, d_hid),
        "w2": xavier_t(k3, d_hid, d_out),
        "b2": bias(k4, d_hid, d_out),
    }


def _reference_forward(params, x, negative_slope=0.01):
    h = x @ params["w1"] + params["b1"]
    h = jnp.where(h >= 0, h, negative_slope * h)
    return h @ params["w2"] + params["b2"]


if __name__ == "__main__":
    # Small shapes implied by the module: ActionMaker(num_stocks, num_features, num_actions)
    num_stocks, num_features, num_actions = 8, 20, 3
    batch = 4
    d_in = num_stocks * num_features + 1          # 161
    d_out = num_stocks * num_actions              # 24

    key = jax.random.PRNGKey(0)
    key, k_x, k_p = jax.random.split(key, 3)
    x = jax.random.normal(k_x, (batch, d_in), jnp.float32)
    params = init_action_maker(k_p, num_stocks, num_features, num_actions)

    q = action_maker_forward(params, x)
    q = jax.block_until_ready(q)

    assert q.shape == (batch, d_out), q.shape
    assert bool(jnp.all(jnp.isfinite(q)))

    # Correctness check against a pure-JAX reference of the same forward pass.
    ref = jax.block_until_ready(_reference_forward(params, x))
    assert bool(jnp.allclose(q, ref, rtol=1e-5, atol=1e-5)), float(
        jnp.max(jnp.abs(q - ref)))

    print("KERNEL_OK")
</pallas_src>

<mosaic_0001>
module attributes {stable_mosaic.version = 11 : i64} {
  func.func @_action_maker_kernel(%arg0: i32, %arg1: memref<4x161xf32, #tpu.memory_space<vmem>>, %arg2: memref<161x80xf32, #tpu.memory_space<vmem>>, %arg3: memref<1x80xf32, #tpu.memory_space<vmem>>, %arg4: memref<80x24xf32, #tpu.memory_space<vmem>>, %arg5: memref<1x24xf32, #tpu.memory_space<vmem>>, %arg6: memref<4x24xf32, #tpu.memory_space<vmem>>) attributes {dimension_semantics = [#tpu.dimension_semantics<parallel>], iteration_bounds = array<i64: 1>, scalar_prefetch = 0 : i64, scratch_operands = 0 : i64, tpu.core_type = #tpu.core_type<tc>, window_params = [{transform_indices = @transform_0, window_bounds = array<i64: 4, 161>}, {pipeline_mode = #tpu.pipeline_mode<synchronous>, transform_indices = @transform_1, window_bounds = array<i64: 161, 80>}, {pipeline_mode = #tpu.pipeline_mode<synchronous>, transform_indices = @transform_2, window_bounds = array<i64: 1, 80>}, {pipeline_mode = #tpu.pipeline_mode<synchronous>, transform_indices = @transform_3, window_bounds = array<i64: 80, 24>}, {pipeline_mode = #tpu.pipeline_mode<synchronous>, transform_indices = @transform_4, window_bounds = array<i64: 1, 24>}, {transform_indices = @transform_5, window_bounds = array<i64: 4, 24>}]} {
    %c0 = arith.constant 0 : index
    %c0_0 = arith.constant 0 : index
    %0 = vector.load %arg1[%c0, %c0_0] : memref<4x161xf32, #tpu.memory_space<vmem>>, vector<4x161xf32>
    %c0_1 = arith.constant 0 : index
    %c0_2 = arith.constant 0 : index
    %1 = vector.load %arg2[%c0_1, %c0_2] : memref<161x80xf32, #tpu.memory_space<vmem>>, vector<161x80xf32>
    %cst = arith.constant dense<0.000000e+00> : vector<4x80xf32>
    %2 = tpu.matmul %0, %1, %cst {dimension_numbers = #tpu.dot_dimension_numbers<[1], [0], [0], [1], [0, 0, 1, 1], [], []>} : vector<4x161xf32>, vector<161x80xf32>, vector<4x80xf32> -> vector<4x80xf32>
    %c0_3 = arith.constant 0 : index
    %c0_4 = arith.constant 0 : index
    %3 = vector.load %arg3[%c0_3, %c0_4] : memref<1x80xf32, #tpu.memory_space<vmem>>, vector<1x80xf32>
    %4 = vector.broadcast %3 : vector<1x80xf32> to vector<4x80xf32>
    %5 = arith.addf %2, %4 : vector<4x80xf32>
    %cst_5 = arith.constant 0.000000e+00 : f32
    %6 = vector.broadcast %cst_5 : f32 to vector<4x80xf32>
    %7 = arith.cmpf oge, %5, %6 : vector<4x80xf32>
    %cst_6 = arith.constant 0.00999999977 : f32
    %8 = vector.broadcast %cst_6 : f32 to vector<4x80xf32>
    %9 = arith.mulf %8, %5 : vector<4x80xf32>
    %10 = arith.select %7, %5, %9 : vector<4x80xi1>, vector<4x80xf32>
    %c0_7 = arith.constant 0 : index
    %c0_8 = arith.constant 0 : index
    %11 = vector.load %arg4[%c0_7, %c0_8] : memref<80x24xf32, #tpu.memory_space<vmem>>, vector<80x24xf32>
    %cst_9 = arith.constant dense<0.000000e+00> : vector<4x24xf32>
    %12 = tpu.matmul %10, %11, %cst_9 {dimension_numbers = #tpu.dot_dimension_numbers<[1], [0], [0], [1], [0, 0, 1, 1], [], []>} : vector<4x80xf32>, vector<80x24xf32>, vector<4x24xf32> -> vector<4x24xf32>
    %c0_10 = arith.constant 0 : index
    %c0_11 = arith.constant 0 : index
    %13 = vector.load %arg5[%c0_10, %c0_11] : memref<1x24xf32, #tpu.memory_space<vmem>>, vector<1x24xf32>
    %14 = vector.broadcast %13 : vector<1x24xf32> to vector<4x24xf32>
    %15 = arith.addf %12, %14 : vector<4x24xf32>
    %c0_12 = arith.constant 0 : index
    %c0_13 = arith.constant 0 : index
    %16 = vector.load %arg6[%c0_12, %c0_13] : memref<4x24xf32, #tpu.memory_space<vmem>>, vector<4x24xf32>
    tpu.vector_store %arg6[%c0_12, %c0_13], %15 {strides = array<i32>} : memref<4x24xf32, #tpu.memory_space<vmem>>, vector<4x24xf32>,
    return
  }
  func.func @transform_0(%arg0: i32) -> (i32, i32) {
    %c0_i32 = arith.constant 0 : i32
    %c0_i32_0 = arith.constant 0 : i32
    return %arg0, %c0_i32 : i32, i32
  }
  func.func @transform_1(%arg0: i32) -> (i32, i32) {
    %c0_i32 = arith.constant 0 : i32
    %c0_i32_0 = arith.constant 0 : i32
    %c0_i32_1 = arith.constant 0 : i32
    return %c0_i32, %c0_i32_0 : i32, i32
  }
  func.func @transform_2(%arg0: i32) -> (i32, i32) {
    %c0_i32 = arith.constant 0 : i32
    %c0_i32_0 = arith.constant 0 : i32
    %c0_i32_1 = arith.constant 0 : i32
    return %c0_i32, %c0_i32_0 : i32, i32
  }
  func.func @transform_3(%arg0: i32) -> (i32, i32) {
    %c0_i32 = arith.constant 0 : i32
    %c0_i32_0 = arith.constant 0 : i32
    %c0_i32_1 = arith.constant 0 : i32
    return %c0_i32, %c0_i32_0 : i32, i32
  }
  func.func @transform_4(%arg0: i32) -> (i32, i32) {
    %c0_i32 = arith.constant 0 : i32
    %c0_i32_0 = arith.constant 0 : i32
    %c0_i32_1 = arith.constant 0 : i32
    return %c0_i32, %c0_i32_0 : i32, i32
  }
  func.func @transform_5(%arg0: i32) -> (i32, i32) {
    %c0_i32 = arith.constant 0 : i32
    %c0_i32_0 = arith.constant 0 : i32
    return %arg0, %c0_i32 : i32, i32
  }
}

</mosaic_0001>

<bundles_post_ra>
// kernel: tpu_custom_call.1
= control target key start
LH: loop header
LB: loop body
LE: loop exit
PB: predicated region body
PF: predicated region fallthrough
CT: control target
= control target key end

     0   :  { %v352_v3 = vmov 0.0|0.0   ;;  %vm52_vm0 = vcmask 269312   ;;  %s520_s0 = inlined_call_operand.vmem [shape: f32[4,161], index: 0, kind: input, shape index: {}]   ;;  %s521_s1 = inlined_call_operand.vmem [shape: f32[161,80], index: 1, kind: input, shape index: {}]   ;;  %s522_s2 = inlined_call_operand.vmem [shape: f32[1,80], index: 2, kind: input, shape index: {}]   ;;  %s523_s3 = inlined_call_operand.vmem [shape: f32[80,24], index: 3, kind: input, shape index: {}]   ;;  %s524_s4 = inlined_call_operand.vmem [shape: f32[1,24], index: 4, kind: input, shape index: {}]   ;;  %s525_s5 = inlined_call_operand.hbm [shape: f32[4,24], index: 5, kind: output, shape index: {}]  }
   0x1   :  { %v22_v0 = vld [vmem:[%s521_s1] sm:$0xff]  ;;  %v23_v1 = vld [vmem:[%s521_s1 + $0x8] sm:$0xff]  ;;  %v24_v2 = vld [vmem:[%s521_s1 + $0x10] sm:$0xff]  ;;  %278 = vmatprep.subr.bf16.mxu0 %v352_v3  ;;  %308 = vmatprep.subr.bf16.mxu1 %v352_v3 }
   0x2   :  { %v279_v4 = vpack.c.bf16 %v23_v1, %v22_v0  ;;  %v25_v5 = vld [vmem:[%s521_s1 + $0x18] sm:$0xff]  ;;  %v26_v7 = vld [vmem:[%s521_s1 + $0x20] sm:$0xff]  ;;  %v27_v8 = vld [vmem:[%s521_s1 + $0x28] sm:$0xff] }
   0x3   :  { %v282_v6 = vpack.c.bf16 %v25_v5, %v24_v2  ;;  %v28_v9 = vld [vmem:[%s521_s1 + $0x30] sm:$0xff]  ;;  %v285_v10 = vpack.c.bf16 %v27_v8, %v26_v7  ;;  %v413_v11 = vld [vmem:[%s520_s0] sm:$0xff]  ;;  %v133_v13 = vld [vmem:[%s523_s3 + $0x8] sm:$0xff] }
   0x4   :  { %280 = vmatpush1.bf16.msra.mxu0 %v279_v4  ;;  %v132_v12 = vld [vmem:[%s523_s3] sm:$0xff]  ;;  %v29_v14 = vld [vmem:[%s521_s1 + $0x38] sm:$0xff]  ;;  %v51_v15 = vcombine.high %v413_v11, %v413_v11  ;;  %v134_v17 = vld [vmem:[%s523_s3 + $0x10] sm:$0xff] }
   0x5   :  { %281 = vmatprep.subr.bf16.mxu0 %v352_v3  ;;  %v309_v16 = vpack.c.bf16 %v133_v13, %v132_v12  ;;  %v135_v18 = vld [vmem:[%s523_s3 + $0x18] sm:$0xff] }
   0x6   :  { %241 = vmatprep.mubr.msk.f32.mxu0 %vm52_vm0, %v51_v15  ;;  %v312_v19 = vpack.c.bf16 %v135_v18, %v134_v17 }
   0x7   :  { %310 = vmatpush3.bf16.msra.mxu1 %v309_v16 }
   0x8   :  { %283 = vmatpush1.bf16.msra.mxu0 %v282_v6 }
   0x9   :  { %284 = vmatprep.subr.bf16.mxu0 %v352_v3 }
   0xa   :  { %10 = vsyncpa [#allocation3], 0  ;;  %v288_v20 = vpack.c.bf16 %v29_v14, %v28_v9  ;;  %311 = vmatprep.subr.bf16.mxu1 %v352_v3  ;;  %v136_v21 = vld [vmem:[%s523_s3 + $0x20] sm:$0xff]  ;;  %v137_v22 = vld [vmem:[%s523_s3 + $0x28] sm:$0xff]  ;;  %v353_v45 = vmov 0.0   ;;  %vm55_vm1 = vcmask 1040384  }
   0xb   :  { %v30_v23 = vld [vmem:[%s521_s1 + $0x40] sm:$0xff]  ;;  %v31_v24 = vld [vmem:[%s521_s1 + $0x48] sm:$0xff]  ;;  %313 = vmatpush3.bf16.msra.mxu1 %v312_v19  ;;  %v315_v25 = vpack.c.bf16 %v137_v22, %v136_v21  ;;  %v138_v27 = vld [vmem:[%s523_s3 + $0x30] sm:$0xff]  ;;  %vm354_vm2 = vmmov 0   ;;  %vm149_vm4 = vcmask 654336   ;;  %vm223_vm5 = vcmask 191488  }
   0xc   :  { %286 = vmatpush1.bf16.msra.mxu0 %v285_v10  ;;  %v291_v26 = vpack.c.bf16 %v31_v24, %v30_v23  ;;  %314 = vmatprep.subr.bf16.mxu1 %v352_v3  ;;  %v139_v28 = vld [vmem:[%s523_s3 + $0x38] sm:$0xff]  ;;  %v32_v29 = vld [vmem:[%s521_s1 + $0x50] sm:$0xff]  ;;  %v34_v33 = vld [vmem:[%s521_s1 + $0x60] sm:$0xff] }
   0xd   :  { %287 = vmatprep.subr.bf16.mxu0 %v352_v3  ;;  %v33_v30 = vld [vmem:[%s521_s1 + $0x58] sm:$0xff]  ;;  %v318_v31 = vpack.c.bf16 %v139_v28, %v138_v27  ;;  %v35_v34 = vld [vmem:[%s521_s1 + $0x68] sm:$0xff]  ;;  %v36_v36 = vld [vmem:[%s521_s1 + $0x70] sm:$0xff]  ;;  %275 = vmatprep.mubr.msk.f32.mxu1 %vm354_vm2, %v353_v45 }
   0xe   :  { %v294_v32 = vpack.c.bf16 %v33_v30, %v32_v29  ;;  %v297_v35 = vpack.c.bf16 %v35_v34, %v34_v33  ;;  %v37_v37 = vld [vmem:[%s521_s1 + $0x78] sm:$0xff]  ;;  %v38_v39 = vld [vmem:[%s521_s1 + $0x80] sm:$0xff]  ;;  %v39_v40 = vld [vmem:[%s521_s1 + $0x88] sm:$0xff] }
   0xf   :  { %316 = vmatpush3.bf16.msra.mxu1 %v315_v25  ;;  %v300_v38 = vpack.c.bf16 %v37_v37, %v36_v36  ;;  %v303_v41 = vpack.c.bf16 %v39_v40, %v38_v39  ;;  %v40_v42 = vld [vmem:[%s521_s1 + $0x90] sm:$0xff]  ;;  %v41_v43 = vld [vmem:[%s521_s1 + $0x98] sm:$0xff]  ;;  %v42_v46 = vld [vmem:[%s521_s1 + $0xa0] sm:$0x1] }
  0x10   :  { %289 = vmatpush1.bf16.msra.mxu0 %v288_v20  ;;  %317 = vmatprep.subr.bf16.mxu1 %v352_v3  ;;  %v306_v44 = vpack.c.bf16 %v41_v43, %v40_v42  ;;  %v140_v47 = vld [vmem:[%s523_s3 + $0x40] sm:$0xff]  ;;  %v141_v48 = vld [vmem:[%s523_s3 + $0x48] sm:$0xff]  ;;  %s355_s3 = smov [#allocation2]  }
  0x11   :  { %290 = vmatprep.subr.bf16.mxu0 %v352_v3  ;;  %v321_v49 = vpack.c.bf16 %v141_v48, %v140_v47  ;;  %v239_v50 = vld [vmem:[%s522_s2] ss:$0 sm:$0xff]  ;;  %s231_s8 = sshll.u32 %s355_s3, 4  ;;  %s232_s8 = int_to_ptr.vmem [resolvable:$true] %s231_s8 }
  0x12   :  { %v242_v56 = vld [vmem:[%s524_s4] ss:$0 sm:$0xff]  ;;  %s328_s2 = scalar_lea.vmem %s232_s8, 64  ;;  %p333_p1 = scmp.lt.s32.totalorder %s232_s8, %s232_s8 }
  0x13   :  { %319 = vmatpush3.bf16.msra.mxu1 %v318_v31  ;;  %p329_p0 = scmp.ne.s32.totalorder %s232_s8, %s328_s2  ;;  %p334_p2 = scmp.lt.s32.totalorder %s328_s2, %s328_s2 }
  0x14   :  { %292 = vmatpush1.bf16.msra.mxu0 %v291_v26  ;;  %320 = vmatprep.subr.bf16.mxu1 %v352_v3 }
  0x15   :  { %293 = vmatprep.subr.bf16.mxu0 %v352_v3  ;;  %p335_p3 = por %p334_p2, %p333_p1 }
  0x17   :  { %322 = vmatpush3.bf16.msra.mxu1 %v321_v49  ;;  %p336_p4 = pnand %p335_p3, %p329_p0 }
  0x18   :  { %295 = vmatpush1.bf16.msra.mxu0 %v294_v32 }
  0x19   :  { %296 = vmatprep.subr.bf16.mxu0 %v352_v3 }
  0x1c   :  { %298 = vmatpush1.bf16.msra.mxu0 %v297_v35 }
  0x1d   :  { %299 = vmatprep.subr.bf16.mxu0 %v352_v3 }
  0x20   :  { %301 = vmatpush1.bf16.msra.mxu0 %v300_v38 }
  0x21   :  { %302 = vmatprep.subr.bf16.mxu0 %v352_v3 }
  0x24   :  { %304 = vmatpush1.bf16.msra.mxu0 %v303_v41 }
  0x25   :  { %305 = vmatprep.subr.bf16.mxu0 %v352_v3 }
  0x28   :  { %307 = vmatpush1.bf16.msra.mxu0 %v306_v44 }
  0x29   :  { %99 = vmatprep.subr.mxu0 %v353_v45 }
  0x2c   :  { %240 = vmatpush1.msk.msra.mxu0 %vm55_vm1, %v42_v46 }
  0x2d   :  { %124 = vmatmul.mubr.f32.vlgmr.msra.gmra.mrb[0].mxu0 %v413_v11 }
 0x100   :  { %v125_v51 = vpop.f32.mrb[0].mxu0 }
 0x101   :  { %v126_v52 = vadd.f32 %v239_v50, %v125_v51  ;;  %v127_v53 = vpop.f32.mrb[1].mxu0 }
 0x103   :  { %vm129_vm3 = vcmp.ge.f32.partialorder %v126_v52, 0.0  ;;  %v130_v54 = vmul.f32 0.01, %v126_v52 }
 0x105   :  { %v131_v55 = vsel %vm129_vm3, %v126_v52, %v130_v54 }
 0x106   :  { %276 = vmatmul.mubr.msk.f32.vlgmr.msra.gmra.mrb[0].mxu1 %vm149_vm4, %v131_v55 }
 0x1d9   :  { %v219_v57 = vpop.f32.mrb[0].mxu1 }
 0x1da   :  { %v220_v58 = vadd.f32 %v242_v56, %v219_v57  ;;  %v277_v59 = vpop.f32.mrb[1].mxu1 }
 0x1dc   :  { %224 = vst.msk [vmem:[#allocation2] sm:$0xf] %vm223_vm5, %v220_v58 }
 0x1dd   :  { %339 = shalt.err (!%p336_p4)
}
 0x1de   :  { %s340_s11 = scalar_lea.hbm %s525_s5, 64 }
 0x1df   :  { %p341_p5 = scmp.ne.s32.totalorder %s525_s5, %s340_s11  ;;  %p344_p6 = scmp.lt.u32.totalorder %s340_s11, %s525_s5 }
 0x1e1   :  { %p346_p7 = pnand %p344_p6, %p341_p5 }
 0x1e3   :  { %349 = shalt.err (!%p346_p7)
}
 0x1e4   :  { %234 = dma.vmem_to_hbm [thread:$0]  %s232_s8, 64, %s525_s5, [#allocation3]  }
 0x1e5   :  { %350 = dma.done.wait [#allocation3], 64  }
 0x1e6   :  { %351 = vsyncadd [#allocation3], 4294967232 }
 0x1e7   :  { %238 = vsyncpa [#allocation3], 1 }

</bundles_post_ra>
